<compile_context>
chip_gen: v5e
topology: v5e:2x2
jax: 0.10.0
libtpu: 0.0.40
codegen_flags: <defaults>
</compile_context>

<pallas_src>
import math
import jax
import jax.numpy as jnp
from jax.experimental import pallas as pl
from jax.experimental.pallas import tpu as pltpu

D_MODEL = 32
FFN_HIDDEN = 64
N_HEAD = 4
HEAD_DIM = D_MODEL // N_HEAD
LN_EPS = 1e-5


def _layernorm(x, gamma, beta):
    mean = jnp.mean(x, axis=-1, keepdims=True)
    var = jnp.mean((x - mean) ** 2, axis=-1, keepdims=True)
    return (x - mean) * jax.lax.rsqrt(var + LN_EPS) * gamma + beta


def fusion_kernel(tag_ref, vis_ref, band_ref,
                  wq_ref, wk_ref, wv_ref, wo_ref, w1_ref, w2_ref,
                  vecs_ref, out_ref):
    BB, T, D = tag_ref.shape
    S = vis_ref.shape[1]
    H = w1_ref.shape[1]
    NH = N_HEAD
    HD = D // NH
    f32 = jnp.float32
    bf16 = jnp.bfloat16

    # Fold the batch block into the matmul M dimension.
    tag2d = tag_ref[...].reshape(BB * T, D)          # (BB*T, D)  f32 (kept for residual)
    vis2d = vis_ref[...].reshape(BB * S, D)          # (BB*S, D)

    # Packed bias / scale vectors (rows, padded to W lanes):
    #   0:bq 1:bk 2:bv 3:bo 4:gamma1 5:beta1 6:b1 7:b2 8:gamma2 9:beta2
    vecs = vecs_ref[...]
    bq = vecs[0:1, :D]
    bk = vecs[1:2, :D]
    bv = vecs[2:3, :D]
    bo = vecs[3:4, :D]
    g1 = vecs[4:5, :D]
    be1 = vecs[5:6, :D]
    b1 = vecs[6:7, :H]
    b2 = vecs[7:8, :D]
    g2 = vecs[8:9, :D]
    be2 = vecs[9:10, :D]

    tag_b = tag2d.astype(bf16)
    vis_b = vis2d.astype(bf16)

    # ---- projections (bf16 operands, f32 accumulate) ----------------------
    q2d = jnp.dot(tag_b, wq_ref[...], preferred_element_type=f32) + bq       # (BB*T, D)
    k2d = jnp.dot(vis_b, wk_ref[...], preferred_element_type=f32) + bk       # (BB*S, D)
    v2d = jnp.dot(vis_b, wv_ref[...], preferred_element_type=f32) + bv       # (BB*S, D)

    q3 = q2d.reshape(BB, T, D)
    k3 = k2d.reshape(BB, S, D)
    v3 = v2d.reshape(BB, S, D)

    # ---- head-batched cross attention --------------------------------------
    # Block-diagonal head mask (precomputed on host): row r belongs to head r//T,
    # lane d to head d//HD.
    band = band_ref[...]                                                     # (NH*T, D) 0/1

    # Replicate q once per head along the sublane axis via a broadcast + leading-dim
    # reshape (no concatenate copy chain), then mask each replica to its head lanes so a
    # single full-width contraction over D yields exact per-head scores.
    q_rep = jnp.broadcast_to(q3[:, None, :, :], (BB, NH, T, D)).reshape(BB, NH * T, D)
    q_stack = (q_rep * band[None, :, :]).astype(bf16)

    scale = 1.0 / math.sqrt(HD)
    s = jnp.einsum('bqd,bsd->bqs', q_stack, k3.astype(bf16),
                   preferred_element_type=f32) * scale                        # (BB, NH*T, S)

    # One (exact) softmax for all heads of all rows in the block.
    m = jnp.max(s, axis=-1, keepdims=True)
    e = jnp.exp(s - m)
    p = e / jnp.sum(e, axis=-1, keepdims=True)

    # Single batched PV matmul; per-head columns selected by cheap VPU masked adds.
    ov = jnp.einsum('bqs,bsd->bqd', p.astype(bf16), v3.astype(bf16),
                    preferred_element_type=f32)                               # (BB, NH*T, D)
    attn3 = ov[:, 0:T, :] * band[0:T, :][None]
    for h in range(1, NH):
        attn3 = attn3 + ov[:, h * T:(h + 1) * T, :] * band[h * T:(h + 1) * T, :][None]

    attn2d = attn3.reshape(BB * T, D)
    attn2d = jnp.dot(attn2d.astype(bf16), wo_ref[...], preferred_element_type=f32) + bo

    # dropout1 = identity (eval); residual + LayerNorm1 (f32)
    x = _layernorm(attn2d + tag2d, g1, be1)

    # ---- feed forward -------------------------------------------------------
    h1 = jnp.maximum(jnp.dot(x.astype(bf16), w1_ref[...], preferred_element_type=f32) + b1,
                     0.0)
    h2 = jnp.dot(h1.astype(bf16), w2_ref[...], preferred_element_type=f32) + b2

    # dropout2 = identity (eval); residual + LayerNorm2 (f32)
    y = _layernorm(h2 + x, g2, be2)
    out_ref[...] = y.reshape(BB, T, D)


def fusion_layer(vision_emb, tag_emb, params, *, num_blocks=None, max_block_b=256,
                 core_parallel=False):
    """num_blocks: number of grid steps over the batch.
       Default: 1 step (no padding waste, best MXU sublane fill) until B exceeds
       max_block_b.  On v7x pass num_blocks=2 and core_parallel=True to shard the two
       blocks across the two TensorCores."""
    B, T, D = tag_emb.shape
    S = vision_emb.shape[1]
    H = params["w1"].shape[1]

    if num_blocks is None:
        num_blocks = pl.cdiv(B, max_block_b)
    block_b = pl.cdiv(B, num_blocks)
    B_pad = block_b * num_blocks
    if B_pad != B:
        pad = B_pad - B
        tag_emb = jnp.pad(tag_emb, ((0, pad), (0, 0), (0, 0)))
        vision_emb = jnp.pad(vision_emb, ((0, pad), (0, 0), (0, 0)))

    # Block-diagonal head mask, built once on host (not re-materialised per grid step).
    row = jnp.arange(N_HEAD * T)[:, None]
    col = jnp.arange(D)[None, :]
    band = ((row // T) == (col // HEAD_DIM)).astype(jnp.float32)             # (NH*T, D)

    # Weights in bf16 (halves weight DMA too); biases/scales stay f32.
    bf16 = jnp.bfloat16
    wq = params["wq"].astype(bf16)
    wk = params["wk"].astype(bf16)
    wv = params["wv"].astype(bf16)
    wo = params["wo"].astype(bf16)
    w1 = params["w1"].astype(bf16)
    w2 = params["w2"].astype(bf16)

    W = max(D, H)

    def _padrow(v):
        v = v.reshape(-1)
        return jnp.pad(v, (0, W - v.shape[0]))

    vecs = jnp.stack([
        _padrow(params["bq"]), _padrow(params["bk"]), _padrow(params["bv"]),
        _padrow(params["bo"]),
        _padrow(params["gamma1"]), _padrow(params["beta1"]),
        _padrow(params["b1"]), _padrow(params["b2"]),
        _padrow(params["gamma2"]), _padrow(params["beta2"]),
    ]).astype(jnp.float32)                                                   # (10, W)

    full2d = lambda shape: pl.BlockSpec(shape, lambda b: (0, 0))

    in_specs = [
        pl.BlockSpec((block_b, T, D), lambda b: (b, 0, 0)),                  # tag block
        pl.BlockSpec((block_b, S, D), lambda b: (b, 0, 0)),                  # vision block
        full2d((N_HEAD * T, D)),                                             # head band mask
        full2d((D, D)),                                                      # wq
        full2d((D, D)),                                                      # wk
        full2d((D, D)),                                                      # wv
        full2d((D, D)),                                                      # wo
        full2d((D, H)),                                                      # w1
        full2d((H, D)),                                                      # w2
        full2d((10, W)),                                                     # packed vectors
    ]

    # v7x: CORE_PARALLEL actually shards the batch-block axis across the 2 TensorCores;
    # plain "parallel" is kept as the safe default on single-TC v5e/v6e.
    dim_sem = (pltpu.CORE_PARALLEL,) if core_parallel else ("parallel",)

    out = pl.pallas_call(
        fusion_kernel,
        out_shape=jax.ShapeDtypeStruct((B_pad, T, D), jnp.float32),
        grid_spec=pltpu.PrefetchScalarGridSpec(
            num_scalar_prefetch=0,
            grid=(num_blocks,),
            in_specs=in_specs,
            out_specs=pl.BlockSpec((block_b, T, D), lambda b: (b, 0, 0)),
        ),
        compiler_params=pltpu.CompilerParams(
            dimension_semantics=dim_sem,
            vmem_limit_bytes=48 * 1024 * 1024,   # headroom below v7x's 64 MiB physical
        ),
    )(tag_emb, vision_emb, band, wq, wk, wv, wo, w1, w2, vecs)
    return out[:B]


def make_params(key, d_model=D_MODEL, ffn_hidden=FFN_HIDDEN):
    ks = jax.random.split(key, 8)
    scale = 0.02
    # PyTorch stores Linear weights as (out, in); we keep them pre-transposed to (in, out)
    # so the kernel computes x @ W directly (same math as x @ W_pt.T).
    p = {
        "wq": jax.random.normal(ks[0], (d_model, d_model), jnp.float32) * scale,
        "wk": jax.random.normal(ks[1], (d_model, d_model), jnp.float32) * scale,
        "wv": jax.random.normal(ks[2], (d_model, d_model), jnp.float32) * scale,
        "bq": jnp.zeros((1, d_model), jnp.float32),
        "bk": jnp.zeros((1, d_model), jnp.float32),
        "bv": jnp.zeros((1, d_model), jnp.float32),
        "wo": jax.random.normal(ks[3], (d_model, d_model), jnp.float32) * scale,
        "bo": jax.random.normal(ks[4], (1, d_model), jnp.float32) * scale,
        "gamma1": jnp.ones((1, d_model), jnp.float32),
        "beta1": jnp.zeros((1, d_model), jnp.float32),
        "w1": jax.random.normal(ks[5], (d_model, ffn_hidden), jnp.float32) * scale,
        "b1": jax.random.normal(ks[6], (1, ffn_hidden), jnp.float32) * scale,
        "w2": jax.random.normal(ks[7], (ffn_hidden, d_model), jnp.float32) * scale,
        "b2": jnp.zeros((1, d_model), jnp.float32),
        "gamma2": jnp.ones((1, d_model), jnp.float32),
        "beta2": jnp.zeros((1, d_model), jnp.float32),
    }
    return p


def fusion_layer_ref(vision_emb, tag_emb, p):
    """Pure-JAX f32 reference matching torch.nn.MultiheadAttention + LayerNorm + FFN (eval)."""
    def ln(x, g, b):
        mean = x.mean(-1, keepdims=True)
        var = ((x - mean) ** 2).mean(-1, keepdims=True)
        return (x - mean) / jnp.sqrt(var + LN_EPS) * g + b

    q = tag_emb @ p["wq"] + p["bq"]
    k = vision_emb @ p["wk"] + p["bk"]
    v = vision_emb @ p["wv"] + p["bv"]
    B, T, D = q.shape
    S = k.shape[1]
    qh = q.reshape(B, T, N_HEAD, HEAD_DIM).transpose(0, 2, 1, 3)
    kh = k.reshape(B, S, N_HEAD, HEAD_DIM).transpose(0, 2, 1, 3)
    vh = v.reshape(B, S, N_HEAD, HEAD_DIM).transpose(0, 2, 1, 3)
    s = jnp.einsum("bhtd,bhsd->bhts", qh, kh) / math.sqrt(HEAD_DIM)
    a = jax.nn.softmax(s, axis=-1)
    o = jnp.einsum("bhts,bhsd->bhtd", a, vh).transpose(0, 2, 1, 3).reshape(B, T, D)
    o = o @ p["wo"] + p["bo"]
    x = ln(o + tag_emb, p["gamma1"], p["beta1"])
    h = jnp.maximum(x @ p["w1"] + p["b1"], 0.0)
    h = h @ p["w2"] + p["b2"]
    return ln(h + x, p["gamma2"], p["beta2"])


if __name__ == "__main__":
    key = jax.random.PRNGKey(0)
    k_tag, k_vis, k_par = jax.random.split(key, 3)

    batch, video_seq_len, num_tags = 2, 16, 8
    vision_emb = jax.random.normal(k_vis, (batch, video_seq_len, D_MODEL), jnp.float32)
    tag_emb = jax.random.normal(k_tag, (batch, num_tags, D_MODEL), jnp.float32)
    params = make_params(k_par)

    out = jax.block_until_ready(fusion_layer(vision_emb, tag_emb, params))
    ref = fusion_layer_ref(vision_emb, tag_emb, params)
    assert out.shape == (batch, num_tags, D_MODEL)
    # Tolerance reflects bf16 matmul operands with f32 accumulation vs the pure-f32 reference
    # (softmax normalisation is exact division now); structural bugs would be O(1) errors.
    err = float(jnp.max(jnp.abs(out - ref)))
    assert jnp.allclose(out, ref, atol=2e-2, rtol=2e-2), err

    # Multi-grid-step path: B=40 split into exactly 2 blocks of 20 (no batch padding waste;
    # on a v7x this is the configuration to pair with core_parallel=True).
    big_b = 40
    kb_tag, kb_vis = jax.random.split(jax.random.PRNGKey(1), 2)
    vis_big = jax.random.normal(kb_vis, (big_b, video_seq_len, D_MODEL), jnp.float32)
    tag_big = jax.random.normal(kb_tag, (big_b, num_tags, D_MODEL), jnp.float32)
    out_big = jax.block_until_ready(fusion_layer(vis_big, tag_big, params, num_blocks=2))
    ref_big = fusion_layer_ref(vis_big, tag_big, params)
    err_big = float(jnp.max(jnp.abs(out_big - ref_big)))
    assert out_big.shape == (big_b, num_tags, D_MODEL)
    assert jnp.allclose(out_big, ref_big, atol=2e-2, rtol=2e-2), err_big

    # TODO(synk): batch-in-lanes repack (4 batch elems per 128-lane group with block-diagonal
    # weights) is the next structural step if profiling shows MXU/VALU lane starvation.
    print("KERNEL_OK")
</pallas_src>

<mosaic_0001>
module attributes {stable_mosaic.version = 11 : i64} {
  func.func @fusion_kernel(%arg0: i32, %arg1: memref<2x8x32xf32, #tpu.memory_space<vmem>>, %arg2: memref<2x16x32xf32, #tpu.memory_space<vmem>>, %arg3: memref<32x32xf32, #tpu.memory_space<vmem>>, %arg4: memref<32x32xbf16, #tpu.memory_space<vmem>>, %arg5: memref<32x32xbf16, #tpu.memory_space<vmem>>, %arg6: memref<32x32xbf16, #tpu.memory_space<vmem>>, %arg7: memref<32x32xbf16, #tpu.memory_space<vmem>>, %arg8: memref<32x64xbf16, #tpu.memory_space<vmem>>, %arg9: memref<64x32xbf16, #tpu.memory_space<vmem>>, %arg10: memref<10x64xf32, #tpu.memory_space<vmem>>, %arg11: memref<2x8x32xf32, #tpu.memory_space<vmem>>) attributes {dimension_semantics = [#tpu.dimension_semantics<parallel>], iteration_bounds = array<i64: 1>, scalar_prefetch = 0 : i64, scratch_operands = 0 : i64, tpu.core_type = #tpu.core_type<tc>, window_params = [{transform_indices = @transform_0, window_bounds = array<i64: 2, 8, 32>}, {transform_indices = @transform_1, window_bounds = array<i64: 2, 16, 32>}, {pipeline_mode = #tpu.pipeline_mode<synchronous>, transform_indices = @transform_2, window_bounds = array<i64: 32, 32>}, {pipeline_mode = #tpu.pipeline_mode<synchronous>, transform_indices = @transform_3, window_bounds = array<i64: 32, 32>}, {pipeline_mode = #tpu.pipeline_mode<synchronous>, transform_indices = @transform_4, window_bounds = array<i64: 32, 32>}, {pipeline_mode = #tpu.pipeline_mode<synchronous>, transform_indices = @transform_5, window_bounds = array<i64: 32, 32>}, {pipeline_mode = #tpu.pipeline_mode<synchronous>, transform_indices = @transform_6, window_bounds = array<i64: 32, 32>}, {pipeline_mode = #tpu.pipeline_mode<synchronous>, transform_indices = @transform_7, window_bounds = array<i64: 32, 64>}, {pipeline_mode = #tpu.pipeline_mode<synchronous>, transform_indices = @transform_8, window_bounds = array<i64: 64, 32>}, {pipeline_mode = #tpu.pipeline_mode<synchronous>, transform_indices = @transform_9, window_bounds = array<i64: 10, 64>}, {transform_indices = @transform_10, window_bounds = array<i64: 2, 8, 32>}]} {
    %c0 = arith.constant 0 : index
    %c0_0 = arith.constant 0 : index
    %c0_1 = arith.constant 0 : index
    %0 = vector.load %arg1[%c0, %c0_0, %c0_1] : memref<2x8x32xf32, #tpu.memory_space<vmem>>, vector<2x8x32xf32>
    %1 = vector.shape_cast %0 : vector<2x8x32xf32> to vector<16x32xf32>
    %c0_2 = arith.constant 0 : index
    %c0_3 = arith.constant 0 : index
    %c0_4 = arith.constant 0 : index
    %2 = vector.load %arg2[%c0_2, %c0_3, %c0_4] : memref<2x16x32xf32, #tpu.memory_space<vmem>>, vector<2x16x32xf32>
    %3 = vector.shape_cast %2 : vector<2x16x32xf32> to vector<32x32xf32>
    %c0_5 = arith.constant 0 : index
    %c0_6 = arith.constant 0 : index
    %4 = vector.load %arg10[%c0_5, %c0_6] : memref<10x64xf32, #tpu.memory_space<vmem>>, vector<10x64xf32>
    %5 = vector.extract_strided_slice %4 {offsets = [0, 0], sizes = [1, 32], strides = [1, 1]} : vector<10x64xf32> to vector<1x32xf32>
    %6 = vector.extract_strided_slice %4 {offsets = [1, 0], sizes = [1, 32], strides = [1, 1]} : vector<10x64xf32> to vector<1x32xf32>
    %7 = vector.extract_strided_slice %4 {offsets = [2, 0], sizes = [1, 32], strides = [1, 1]} : vector<10x64xf32> to vector<1x32xf32>
    %8 = vector.extract_strided_slice %4 {offsets = [3, 0], sizes = [1, 32], strides = [1, 1]} : vector<10x64xf32> to vector<1x32xf32>
    %9 = vector.extract_strided_slice %4 {offsets = [4, 0], sizes = [1, 32], strides = [1, 1]} : vector<10x64xf32> to vector<1x32xf32>
    %10 = vector.extract_strided_slice %4 {offsets = [5, 0], sizes = [1, 32], strides = [1, 1]} : vector<10x64xf32> to vector<1x32xf32>
    %11 = vector.extract_strided_slice %4 {offsets = [6, 0], sizes = [1, 64], strides = [1, 1]} : vector<10x64xf32> to vector<1x64xf32>
    %12 = vector.extract_strided_slice %4 {offsets = [7, 0], sizes = [1, 32], strides = [1, 1]} : vector<10x64xf32> to vector<1x32xf32>
    %13 = vector.extract_strided_slice %4 {offsets = [8, 0], sizes = [1, 32], strides = [1, 1]} : vector<10x64xf32> to vector<1x32xf32>
    %14 = vector.extract_strided_slice %4 {offsets = [9, 0], sizes = [1, 32], strides = [1, 1]} : vector<10x64xf32> to vector<1x32xf32>
    %15 = arith.truncf %1 : vector<16x32xf32> to vector<16x32xbf16>
    %16 = arith.truncf %3 : vector<32x32xf32> to vector<32x32xbf16>
    %c0_7 = arith.constant 0 : index
    %c0_8 = arith.constant 0 : index
    %17 = vector.load %arg4[%c0_7, %c0_8] : memref<32x32xbf16, #tpu.memory_space<vmem>>, vector<32x32xbf16>
    %cst = arith.constant dense<0.000000e+00> : vector<16x32xf32>
    %18 = tpu.matmul %15, %17, %cst {dimension_numbers = #tpu.dot_dimension_numbers<[1], [0], [0], [1], [0, 0, 1, 1], [], []>} : vector<16x32xbf16>, vector<32x32xbf16>, vector<16x32xf32> -> vector<16x32xf32>
    %19 = vector.broadcast %5 : vector<1x32xf32> to vector<16x32xf32>
    %20 = arith.addf %18, %19 : vector<16x32xf32>
    %c0_9 = arith.constant 0 : index
    %c0_10 = arith.constant 0 : index
    %21 = vector.load %arg5[%c0_9, %c0_10] : memref<32x32xbf16, #tpu.memory_space<vmem>>, vector<32x32xbf16>
    %cst_11 = arith.constant dense<0.000000e+00> : vector<32x32xf32>
    %22 = tpu.matmul %16, %21, %cst_11 {dimension_numbers = #tpu.dot_dimension_numbers<[1], [0], [0], [1], [0, 0, 1, 1], [], []>} : vector<32x32xbf16>, vector<32x32xbf16>, vector<32x32xf32> -> vector<32x32xf32>
    %23 = vector.broadcast %6 : vector<1x32xf32> to vector<32x32xf32>
    %24 = arith.addf %22, %23 : vector<32x32xf32>
    %c0_12 = arith.constant 0 : index
    %c0_13 = arith.constant 0 : index
    %25 = vector.load %arg6[%c0_12, %c0_13] : memref<32x32xbf16, #tpu.memory_space<vmem>>, vector<32x32xbf16>
    %cst_14 = arith.constant dense<0.000000e+00> : vector<32x32xf32>
    %26 = tpu.matmul %16, %25, %cst_14 {dimension_numbers = #tpu.dot_dimension_numbers<[1], [0], [0], [1], [0, 0, 1, 1], [], []>} : vector<32x32xbf16>, vector<32x32xbf16>, vector<32x32xf32> -> vector<32x32xf32>
    %27 = vector.broadcast %7 : vector<1x32xf32> to vector<32x32xf32>
    %28 = arith.addf %26, %27 : vector<32x32xf32>
    %29 = vector.shape_cast %20 : vector<16x32xf32> to vector<2x8x32xf32>
    %30 = vector.shape_cast %24 : vector<32x32xf32> to vector<2x16x32xf32>
    %31 = vector.shape_cast %28 : vector<32x32xf32> to vector<2x16x32xf32>
    %c0_15 = arith.constant 0 : index
    %c0_16 = arith.constant 0 : index
    %32 = vector.load %arg3[%c0_15, %c0_16] : memref<32x32xf32, #tpu.memory_space<vmem>>, vector<32x32xf32>
    %33 = vector.shape_cast %29 : vector<2x8x32xf32> to vector<2x1x8x32xf32>
    %34 = vector.shape_cast %33 : vector<2x1x8x32xf32> to vector<2x1x8x32xf32>
    %35 = vector.broadcast %34 : vector<2x1x8x32xf32> to vector<2x4x8x32xf32>
    %36 = vector.shape_cast %35 : vector<2x4x8x32xf32> to vector<2x32x32xf32>
    %37 = vector.shape_cast %32 : vector<32x32xf32> to vector<1x32x32xf32>
    %38 = vector.broadcast %37 : vector<1x32x32xf32> to vector<2x32x32xf32>
    %39 = arith.mulf %36, %38 : vector<2x32x32xf32>
    %40 = arith.truncf %39 : vector<2x32x32xf32> to vector<2x32x32xbf16>
    %41 = arith.truncf %30 : vector<2x16x32xf32> to vector<2x16x32xbf16>
    "tpu.trace_start"() <{level = 10 : i32, message = "bqd,bsd->bqs"}> : () -> ()
    %cst_17 = arith.constant dense<0.000000e+00> : vector<2x32x16xf32>
    %42 = tpu.matmul %40, %41, %cst_17 {dimension_numbers = #tpu.dot_dimension_numbers<[2], [2], [1], [1], [0, 0, 0, 1, 1, 1], [0], [0]>} : vector<2x32x32xbf16>, vector<2x16x32xbf16>, vector<2x32x16xf32> -> vector<2x32x16xf32>
    "tpu.trace_stop"() : () -> ()
    %cst_18 = arith.constant 0.353553385 : f32
    %43 = vector.broadcast %cst_18 : f32 to vector<2x32x16xf32>
    %44 = arith.mulf %42, %43 : vector<2x32x16xf32>
    %cst_19 = arith.constant dense<0xFF800000> : vector<2x32xf32>
    %45 = vector.multi_reduction <maximumf>, %44, %cst_19 [2] : vector<2x32x16xf32> to vector<2x32xf32>
    %46 = vector.shape_cast %45 : vector<2x32xf32> to vector<2x32x1xf32>
    %47 = vector.broadcast %46 : vector<2x32x1xf32> to vector<2x32x16xf32>
    %48 = arith.subf %44, %47 : vector<2x32x16xf32>
    %49 = math.exp %48 : vector<2x32x16xf32>
    %cst_20 = arith.constant dense<0.000000e+00> : vector<2x32xf32>
    %50 = vector.multi_reduction <add>, %49, %cst_20 [2] : vector<2x32x16xf32> to vector<2x32xf32>
    %51 = vector.shape_cast %50 : vector<2x32xf32> to vector<2x32x1xf32>
    %52 = vector.broadcast %51 : vector<2x32x1xf32> to vector<2x32x16xf32>
    %53 = arith.divf %49, %52 : vector<2x32x16xf32>
    %54 = arith.truncf %53 : vector<2x32x16xf32> to vector<2x32x16xbf16>
    %55 = arith.truncf %31 : vector<2x16x32xf32> to vector<2x16x32xbf16>
    "tpu.trace_start"() <{level = 10 : i32, message = "bqs,bsd->bqd"}> : () -> ()
    %cst_21 = arith.constant dense<0.000000e+00> : vector<2x32x32xf32>
    %56 = tpu.matmul %54, %55, %cst_21 {dimension_numbers = #tpu.dot_dimension_numbers<[2], [1], [1], [2], [0, 0, 0, 1, 1, 2], [0], [0]>} : vector<2x32x16xbf16>, vector<2x16x32xbf16>, vector<2x32x32xf32> -> vector<2x32x32xf32>
    "tpu.trace_stop"() : () -> ()
    %57 = vector.extract_strided_slice %56 {offsets = [0, 0, 0], sizes = [2, 8, 32], strides = [1, 1, 1]} : vector<2x32x32xf32> to vector<2x8x32xf32>
    %58 = vector.extract_strided_slice %32 {offsets = [0, 0], sizes = [8, 32], strides = [1, 1]} : vector<32x32xf32> to vector<8x32xf32>
    %59 = vector.shape_cast %58 : vector<8x32xf32> to vector<1x8x32xf32>
    %60 = vector.broadcast %59 : vector<1x8x32xf32> to vector<2x8x32xf32>
    %61 = arith.mulf %57, %60 : vector<2x8x32xf32>
    %62 = vector.extract_strided_slice %56 {offsets = [0, 8, 0], sizes = [2, 8, 32], strides = [1, 1, 1]} : vector<2x32x32xf32> to vector<2x8x32xf32>
    %63 = vector.extract_strided_slice %32 {offsets = [8, 0], sizes = [8, 32], strides = [1, 1]} : vector<32x32xf32> to vector<8x32xf32>
    %64 = vector.shape_cast %63 : vector<8x32xf32> to vector<1x8x32xf32>
    %65 = vector.broadcast %64 : vector<1x8x32xf32> to vector<2x8x32xf32>
    %66 = arith.mulf %62, %65 : vector<2x8x32xf32>
    %67 = arith.addf %61, %66 : vector<2x8x32xf32>
    %68 = vector.extract_strided_slice %56 {offsets = [0, 16, 0], sizes = [2, 8, 32], strides = [1, 1, 1]} : vector<2x32x32xf32> to vector<2x8x32xf32>
    %69 = vector.extract_strided_slice %32 {offsets = [16, 0], sizes = [8, 32], strides = [1, 1]} : vector<32x32xf32> to vector<8x32xf32>
    %70 = vector.shape_cast %69 : vector<8x32xf32> to vector<1x8x32xf32>
    %71 = vector.broadcast %70 : vector<1x8x32xf32> to vector<2x8x32xf32>
    %72 = arith.mulf %68, %71 : vector<2x8x32xf32>
    %73 = arith.addf %67, %72 : vector<2x8x32xf32>
    %74 = vector.extract_strided_slice %56 {offsets = [0, 24, 0], sizes = [2, 8, 32], strides = [1, 1, 1]} : vector<2x32x32xf32> to vector<2x8x32xf32>
    %75 = vector.extract_strided_slice %32 {offsets = [24, 0], sizes = [8, 32], strides = [1, 1]} : vector<32x32xf32> to vector<8x32xf32>
    %76 = vector.shape_cast %75 : vector<8x32xf32> to vector<1x8x32xf32>
    %77 = vector.broadcast %76 : vector<1x8x32xf32> to vector<2x8x32xf32>
    %78 = arith.mulf %74, %77 : vector<2x8x32xf32>
    %79 = arith.addf %73, %78 : vector<2x8x32xf32>
    %80 = vector.shape_cast %79 : vector<2x8x32xf32> to vector<16x32xf32>
    %81 = arith.truncf %80 : vector<16x32xf32> to vector<16x32xbf16>
    %c0_22 = arith.constant 0 : index
    %c0_23 = arith.constant 0 : index
    %82 = vector.load %arg7[%c0_22, %c0_23] : memref<32x32xbf16, #tpu.memory_space<vmem>>, vector<32x32xbf16>
    %cst_24 = arith.constant dense<0.000000e+00> : vector<16x32xf32>
    %83 = tpu.matmul %81, %82, %cst_24 {dimension_numbers = #tpu.dot_dimension_numbers<[1], [0], [0], [1], [0, 0, 1, 1], [], []>} : vector<16x32xbf16>, vector<32x32xbf16>, vector<16x32xf32> -> vector<16x32xf32>
    %84 = vector.broadcast %8 : vector<1x32xf32> to vector<16x32xf32>
    %85 = arith.addf %83, %84 : vector<16x32xf32>
    %86 = arith.addf %85, %1 : vector<16x32xf32>
    %cst_25 = arith.constant dense<0.000000e+00> : vector<16xf32>
    %87 = vector.multi_reduction <add>, %86, %cst_25 [1] : vector<16x32xf32> to vector<16xf32>
    %88 = vector.shape_cast %87 : vector<16xf32> to vector<16x1xf32>
    %cst_26 = arith.constant 3.200000e+01 : f32
    %89 = vector.broadcast %cst_26 : f32 to vector<16x1xf32>
    %90 = arith.divf %88, %89 : vector<16x1xf32>
    %91 = vector.broadcast %90 : vector<16x1xf32> to vector<16x32xf32>
    %92 = arith.subf %86, %91 : vector<16x32xf32>
    %93 = arith.mulf %92, %92 : vector<16x32xf32>
    %cst_27 = arith.constant dense<0.000000e+00> : vector<16xf32>
    %94 = vector.multi_reduction <add>, %93, %cst_27 [1] : vector<16x32xf32> to vector<16xf32>
    %95 = vector.shape_cast %94 : vector<16xf32> to vector<16x1xf32>
    %cst_28 = arith.constant 3.200000e+01 : f32
    %96 = vector.broadcast %cst_28 : f32 to vector<16x1xf32>
    %97 = arith.divf %95, %96 : vector<16x1xf32>
    %98 = vector.broadcast %90 : vector<16x1xf32> to vector<16x32xf32>
    %99 = arith.subf %86, %98 : vector<16x32xf32>
    %cst_29 = arith.constant 9.99999974E-6 : f32
    %100 = vector.broadcast %cst_29 : f32 to vector<16x1xf32>
    %101 = arith.addf %97, %100 : vector<16x1xf32>
    %102 = math.rsqrt %101 : vector<16x1xf32>
    %103 = vector.broadcast %102 : vector<16x1xf32> to vector<16x32xf32>
    %104 = arith.mulf %99, %103 : vector<16x32xf32>
    %105 = vector.broadcast %9 : vector<1x32xf32> to vector<16x32xf32>
    %106 = arith.mulf %104, %105 : vector<16x32xf32>
    %107 = vector.broadcast %10 : vector<1x32xf32> to vector<16x32xf32>
    %108 = arith.addf %106, %107 : vector<16x32xf32>
    %109 = arith.truncf %108 : vector<16x32xf32> to vector<16x32xbf16>
    %c0_30 = arith.constant 0 : index
    %c0_31 = arith.constant 0 : index
    %110 = vector.load %arg8[%c0_30, %c0_31] : memref<32x64xbf16, #tpu.memory_space<vmem>>, vector<32x64xbf16>
    %cst_32 = arith.constant dense<0.000000e+00> : vector<16x64xf32>
    %111 = tpu.matmul %109, %110, %cst_32 {dimension_numbers = #tpu.dot_dimension_numbers<[1], [0], [0], [1], [0, 0, 1, 1], [], []>} : vector<16x32xbf16>, vector<32x64xbf16>, vector<16x64xf32> -> vector<16x64xf32>
    %112 = vector.broadcast %11 : vector<1x64xf32> to vector<16x64xf32>
    %113 = arith.addf %111, %112 : vector<16x64xf32>
    %cst_33 = arith.constant 0.000000e+00 : f32
    %114 = vector.broadcast %cst_33 : f32 to vector<16x64xf32>
    %115 = arith.maximumf %113, %114 : vector<16x64xf32>
    %116 = arith.truncf %115 : vector<16x64xf32> to vector<16x64xbf16>
    %c0_34 = arith.constant 0 : index
    %c0_35 = arith.constant 0 : index
    %117 = vector.load %arg9[%c0_34, %c0_35] : memref<64x32xbf16, #tpu.memory_space<vmem>>, vector<64x32xbf16>
    %cst_36 = arith.constant dense<0.000000e+00> : vector<16x32xf32>
    %118 = tpu.matmul %116, %117, %cst_36 {dimension_numbers = #tpu.dot_dimension_numbers<[1], [0], [0], [1], [0, 0, 1, 1], [], []>} : vector<16x64xbf16>, vector<64x32xbf16>, vector<16x32xf32> -> vector<16x32xf32>
    %119 = vector.broadcast %12 : vector<1x32xf32> to vector<16x32xf32>
    %120 = arith.addf %118, %119 : vector<16x32xf32>
    %121 = arith.addf %120, %108 : vector<16x32xf32>
    %cst_37 = arith.constant dense<0.000000e+00> : vector<16xf32>
    %122 = vector.multi_reduction <add>, %121, %cst_37 [1] : vector<16x32xf32> to vector<16xf32>
    %123 = vector.shape_cast %122 : vector<16xf32> to vector<16x1xf32>
    %cst_38 = arith.constant 3.200000e+01 : f32
    %124 = vector.broadcast %cst_38 : f32 to vector<16x1xf32>
    %125 = arith.divf %123, %124 : vector<16x1xf32>
    %126 = vector.broadcast %125 : vector<16x1xf32> to vector<16x32xf32>
    %127 = arith.subf %121, %126 : vector<16x32xf32>
    %128 = arith.mulf %127, %127 : vector<16x32xf32>
    %cst_39 = arith.constant dense<0.000000e+00> : vector<16xf32>
    %129 = vector.multi_reduction <add>, %128, %cst_39 [1] : vector<16x32xf32> to vector<16xf32>
    %130 = vector.shape_cast %129 : vector<16xf32> to vector<16x1xf32>
    %cst_40 = arith.constant 3.200000e+01 : f32
    %131 = vector.broadcast %cst_40 : f32 to vector<16x1xf32>
    %132 = arith.divf %130, %131 : vector<16x1xf32>
    %133 = vector.broadcast %125 : vector<16x1xf32> to vector<16x32xf32>
    %134 = arith.subf %121, %133 : vector<16x32xf32>
    %cst_41 = arith.constant 9.99999974E-6 : f32
    %135 = vector.broadcast %cst_41 : f32 to vector<16x1xf32>
    %136 = arith.addf %132, %135 : vector<16x1xf32>
    %137 = math.rsqrt %136 : vector<16x1xf32>
    %138 = vector.broadcast %137 : vector<16x1xf32> to vector<16x32xf32>
    %139 = arith.mulf %134, %138 : vector<16x32xf32>
    %140 = vector.broadcast %13 : vector<1x32xf32> to vector<16x32xf32>
    %141 = arith.mulf %139, %140 : vector<16x32xf32>
    %142 = vector.broadcast %14 : vector<1x32xf32> to vector<16x32xf32>
    %143 = arith.addf %141, %142 : vector<16x32xf32>
    %144 = vector.shape_cast %143 : vector<16x32xf32> to vector<2x8x32xf32>
    %c0_42 = arith.constant 0 : index
    %c0_43 = arith.constant 0 : index
    %c0_44 = arith.constant 0 : index
    %145 = vector.load %arg11[%c0_42, %c0_43, %c0_44] : memref<2x8x32xf32, #tpu.memory_space<vmem>>, vector<2x8x32xf32>
    tpu.vector_store %arg11[%c0_42, %c0_43, %c0_44], %144 {strides = array<i32>} : memref<2x8x32xf32, #tpu.memory_space<vmem>>, vector<2x8x32xf32>,
    return
  }
  func.func @transform_0(%arg0: i32) -> (i32, i32, i32) {
    %c0_i32 = arith.constant 0 : i32
    %c0_i32_0 = arith.constant 0 : i32
    %c0_i32_1 = arith.constant 0 : i32
    return %arg0, %c0_i32, %c0_i32_0 : i32, i32, i32
  }
  func.func @transform_1(%arg0: i32) -> (i32, i32, i32) {
    %c0_i32 = arith.constant 0 : i32
    %c0_i32_0 = arith.constant 0 : i32
    %c0_i32_1 = arith.constant 0 : i32
    return %arg0, %c0_i32, %c0_i32_0 : i32, i32, i32
  }
  func.func @transform_2(%arg0: i32) -> (i32, i32) {
    %c0_i32 = arith.constant 0 : i32
    %c0_i32_0 = arith.constant 0 : i32
    %c0_i32_1 = arith.constant 0 : i32
    return %c0_i32, %c0_i32_0 : i32, i32
  }
  func.func @transform_3(%arg0: i32) -> (i32, i32) {
    %c0_i32 = arith.constant 0 : i32
    %c0_i32_0 = arith.constant 0 : i32
    %c0_i32_1 = arith.constant 0 : i32
    return %c0_i32, %c0_i32_0 : i32, i32
  }
  func.func @transform_4(%arg0: i32) -> (i32, i32) {
    %c0_i32 = arith.constant 0 : i32
    %c0_i32_0 = arith.constant 0 : i32
    %c0_i32_1 = arith.constant 0 : i32
    return %c0_i32, %c0_i32_0 : i32, i32
  }
  func.func @transform_5(%arg0: i32) -> (i32, i32) {
    %c0_i32 = arith.constant 0 : i32
    %c0_i32_0 = arith.constant 0 : i32
    %c0_i32_1 = arith.constant 0 : i32
    return %c0_i32, %c0_i32_0 : i32, i32
  }
  func.func @transform_6(%arg0: i32) -> (i32, i32) {
    %c0_i32 = arith.constant 0 : i32
    %c0_i32_0 = arith.constant 0 : i32
    %c0_i32_1 = arith.constant 0 : i32
    return %c0_i32, %c0_i32_0 : i32, i32
  }
  func.func @transform_7(%arg0: i32) -> (i32, i32) {
    %c0_i32 = arith.constant 0 : i32
    %c0_i32_0 = arith.constant 0 : i32
    %c0_i32_1 = arith.constant 0 : i32
    return %c0_i32, %c0_i32_0 : i32, i32
  }
  func.func @transform_8(%arg0: i32) -> (i32, i32) {
    %c0_i32 = arith.constant 0 : i32
    %c0_i32_0 = arith.constant 0 : i32
    %c0_i32_1 = arith.constant 0 : i32
    return %c0_i32, %c0_i32_0 : i32, i32
  }
  func.func @transform_9(%arg0: i32) -> (i32, i32) {
    %c0_i32 = arith.constant 0 : i32
    %c0_i32_0 = arith.constant 0 : i32
    %c0_i32_1 = arith.constant 0 : i32
    return %c0_i32, %c0_i32_0 : i32, i32
  }
  func.func @transform_10(%arg0: i32) -> (i32, i32, i32) {
    %c0_i32 = arith.constant 0 : i32
    %c0_i32_0 = arith.constant 0 : i32
    %c0_i32_1 = arith.constant 0 : i32
    return %arg0, %c0_i32, %c0_i32_0 : i32, i32, i32
  }
}

</mosaic_0001>

<bundles_post_ra>
// kernel: tpu_custom_call.1
= control target key start
LH: loop header
LB: loop body
LE: loop exit
PB: predicated region body
PF: predicated region fallthrough
CT: control target
= control target key end

     0   :  { %15 = vsyncpa [#allocation3], 0  ;;  %s1644_s0 = inlined_call_operand.vmem [shape: f32[2,8,32], index: 0, kind: input, shape index: {}]   ;;  %s1645_s1 = inlined_call_operand.vmem [shape: f32[2,16,32], index: 1, kind: input, shape index: {}]   ;;  %s1646_s2 = inlined_call_operand.hbm [shape: f32[32,32], index: 2, kind: input, shape index: {}]   ;;  %s1647_s3 = inlined_call_operand.hbm [shape: bf16[32,32], index: 3, kind: input, shape index: {}]   ;;  %s1648_s4 = inlined_call_operand.hbm [shape: bf16[32,32], index: 4, kind: input, shape index: {}]   ;;  %s1649_s5 = inlined_call_operand.hbm [shape: bf16[32,32], index: 5, kind: input, shape index: {}]   ;;  %s1650_s6 = inlined_call_operand.hbm [shape: bf16[32,32], index: 6, kind: input, shape index: {}]   ;;  %s1651_s7 = inlined_call_operand.hbm [shape: bf16[32,64], index: 7, kind: input, shape index: {}]   ;;  %s1652_s8 = inlined_call_operand.vmem [shape: bf16[64,32], index: 8, kind: input, shape index: {}]   ;;  %s1653_s9 = inlined_call_operand.hbm [shape: f32[10,64], index: 9, kind: input, shape index: {}]   ;;  %s1654_s10 = inlined_call_operand.hbm [shape: f32[2,8,32], index: 10, kind: output, shape index: {}]  }
   0x1   :  { %16 = vsyncpa [#allocation6], 0 }
   0x2   :  { %17 = vsyncpa [#allocation9], 0 }
   0x3   :  { %18 = vsyncpa [#allocation12], 0  ;;  %s41_s15 = sshll.u32 %s1647_s3, 4  ;;  %s42_s15 = int_to_ptr.hbm [resolvable:$true] %s41_s15 }
   0x4   :  { %19 = vsyncpa [#allocation4], 0  ;;  %s1291_s16 = smov [#allocation5]   ;;  %s67_s20 = sshll.u32 %s1649_s5, 4  ;;  %s68_s20 = int_to_ptr.hbm [resolvable:$true] %s67_s20 }
   0x5   :  { %s43_s17 = sshll.u32 %s1291_s16, 4  ;;  %s1292_s21 = smov 64   ;;  %s44_s17 = int_to_ptr.vmem [resolvable:$true] %s43_s17 }
   0x6   :  { %s1293_s22 = smov 4   ;;  %s1294_s23 = smov [#allocation8]  }
   0x7   :  { %49 = dma.hbm_to_vmem [thread:$0]  %s42_s15, 256, %s44_s17, [#allocation6], %s1292_s21, %s1292_s21, %s1293_s22  }
   0x8   :  { %s69_s24 = sshll.u32 %s1294_s23, 4  ;;  %s93_s26 = sshll.u32 %s1651_s7, 4  ;;  %s70_s24 = int_to_ptr.vmem [resolvable:$true] %s69_s24  ;;  %s94_s26 = int_to_ptr.hbm [resolvable:$true] %s93_s26 }
   0x9   :  { %75 = dma.hbm_to_vmem [thread:$0]  %s68_s20, 256, %s70_s24, [#allocation9], %s1292_s21, %s1292_s21, %s1293_s22  }
   0xa   :  { %s28_s28 = sshll.u32 %s1646_s2, 4  ;;  %s1295_s29 = smov [#allocation11]   ;;  %s29_s28 = int_to_ptr.hbm [resolvable:$true] %s28_s28 }
   0xb   :  { %s95_s30 = sshll.u32 %s1295_s29, 4  ;;  %s1296_s11 = smov [#allocation2]   ;;  %s96_s30 = int_to_ptr.vmem [resolvable:$true] %s95_s30 }
   0xc   :  { %101 = dma.hbm_to_vmem [thread:$0]  %s94_s26, 256, %s96_s30, [#allocation12], %s1292_s21, %s1292_s21, %s1293_s22  }
   0xd   :  { %s30_s7 = sshll.u32 %s1296_s11, 4  ;;  %s1297_s12 = smov 128   ;;  %s31_s7 = int_to_ptr.vmem [resolvable:$true] %s30_s7 }
   0xe   :  { %s1298_s13 = smov 8   ;;  %s54_s2 = sshll.u32 %s1648_s4, 4  ;;  %s55_s2 = int_to_ptr.hbm [resolvable:$true] %s54_s2 }
   0xf   :  { %36 = dma.hbm_to_vmem [thread:$0]  %s29_s28, 512, %s31_s7, [#allocation3], %s1297_s12, %s1297_s12, %s1298_s13  }
  0x10   :  { %s1299_s16 = smov [#allocation7]   ;;  %s80_s20 = sshll.u32 %s1650_s6, 4  ;;  %s81_s20 = int_to_ptr.hbm [resolvable:$true] %s80_s20 }
  0x11   :  { %s56_s17 = sshll.u32 %s1299_s16, 4  ;;  %s1300_s23 = smov [#allocation10]   ;;  %s57_s17 = int_to_ptr.vmem [resolvable:$true] %s56_s17 }
  0x12   :  { %62 = dma.hbm_to_vmem [thread:$0]  %s55_s2, 256, %s57_s17, [#allocation6], %s1292_s21, %s1292_s21, %s1293_s22  }
  0x13   :  { %s82_s24 = sshll.u32 %s1300_s23, 4  ;;  %s108_s26 = sshll.u32 %s1653_s9, 4  ;;  %s83_s24 = int_to_ptr.vmem [resolvable:$true] %s82_s24  ;;  %s109_s26 = int_to_ptr.hbm [resolvable:$true] %s108_s26 }
  0x14   :  { %88 = dma.hbm_to_vmem [thread:$0]  %s81_s20, 256, %s83_s24, [#allocation9], %s1292_s21, %s1292_s21, %s1293_s22  }
  0x15   :  { %s1301_s4 = smov [#allocation13]  }
  0x16   :  { %s110_s5 = sshll.u32 %s1301_s4, 4  ;;  %s111_s5 = int_to_ptr.vmem [resolvable:$true] %s110_s5 }
  0x17   :  { %116 = dma.hbm_to_vmem [thread:$0]  %s109_s26, 256, %s111_s5, [#allocation12], %s1297_s12, %s1297_s12, %s1298_s13  }
  0x18   :  { %1281 = dma.done.wait [#allocation3], 512  }
  0x19   :  { %1282 = vsyncadd [#allocation3], 4294966784 }
  0x1a   :  { %1283 = dma.done.wait [#allocation6], 512  }
  0x1b   :  { %1284 = vsyncadd [#allocation6], 4294966784 }
  0x1c   :  { %1285 = dma.done.wait [#allocation9], 512  }
  0x1d   :  { %1286 = vsyncadd [#allocation9], 4294966784 }
  0x1e   :  { %1287 = dma.done.wait [#allocation12], 512  }
  0x1f   :  { %1288 = vsyncadd [#allocation12], 4294966784  ;;  %v1023_v0 = vld [vmem:[#allocation7 + $0x8] sm:$0xff]  ;;  %v1021_v1 = vld [vmem:[#allocation5 + $0x8] sm:$0xff]  ;;  %vm174_vm0 = vcmask 261120   ;;  %vm388_vm1 = vcmask 130048  }
  0x20   :  { %221 = vmatpush.bf16.msra.mxu1 %v1023_v0  ;;  %v1022_v2 = vld [vmem:[#allocation7] sm:$0xff]  ;;  %v148_v3 = vld [vmem:[%s1645_s1] sm:$0xff]  ;;  %v149_v4 = vld [vmem:[%s1645_s1 + $0x8] sm:$0xff]  ;;  %184 = vmatpush.bf16.msra.mxu0 %v1021_v1  ;;  %s932_s3 = sshll.u32 %s1654_s10, 4  ;;  %s933_s3 = int_to_ptr.hbm [resolvable:$true] %s932_s3 }
  0x21   :  { %v1020_v5 = vld [vmem:[#allocation5] sm:$0xff]  ;;  %v1415_v7 = vld [vmem:[%s1644_s0 + $0x8] sm:$0xff]  ;;  %v1417_v8 = vpack.c.bf16 %v149_v4, %v148_v3  ;;  %v150_v10 = vld [vmem:[%s1645_s1 + $0x10] sm:$0xff] }
  0x22   :  { %v1410_v6 = vld [vmem:[%s1644_s0] sm:$0xff]  ;;  %v151_v11 = vld [vmem:[%s1645_s1 + $0x18] sm:$0xff]  ;;  %v1434_v13 = vld [vmem:[#allocation13] sm:$0xff] }
  0x23   :  { %v154_v9 = vpack.c.bf16 %v1415_v7, %v1410_v6  ;;  %v1430_v12 = vpack.c.bf16 %v151_v11, %v150_v10  ;;  %v196_v15 = vperm.slane %v1434_v13, 1  ;;  %v161_v16 = vperm.slane %v1434_v13, 0  ;;  %v1438_v20 = vld [vmem:[#allocation2] sm:$0xff]  ;;  %v1440_v21 = vld [vmem:[#allocation2 + $0x8] sm:$0xff]  ;;  %v1445_v41 = vld [vmem:[#allocation2 + $0x10] sm:$0xff] }
  0x24   :  { %222 = vmatpush.bf16.msra.mxu1 %v1022_v2  ;;  %185 = vmatpush.bf16.msra.mxu0 %v1020_v5  ;;  %v1447_v43 = vld [vmem:[#allocation2 + $0x18] sm:$0xff] }
  0x27   :  { %965 = vmatmul.msk.bf16.vlgmr.msra.gmra.mxu1 %vm174_vm0, %v1417_v8  ;;  %956 = vmatmul.msk.bf16.vlgmr.msra.gmra.mxu0 %vm174_vm0, %v154_v9 }
  0x37   :  { %966 = vmatmul.msk.bf16.gmra.mxu1 %vm174_vm0, %v1430_v12 }
  0xa4   :  { %v224_v14 = vpop.f32.mrf.mxu1  ;;  %v187_v17 = vpop.f32.mrf.mxu0 }
  0xa5   :  { %v225_v18 = vadd.f32 %v224_v14, %v196_v15  ;;  %v188_v19 = vadd.f32 %v187_v17, %v161_v16 }
  0xa7   :  { %v290_v23 = vpack.c.bf16 %v225_v18, %v225_v18  ;;  %v274_v25 = vmul.f32 %v1438_v20, %v188_v19  ;;  %v275_v26 = vmul.f32 %v1440_v21, %v188_v19  ;;  %v276_v46 = vmul.f32 %v1445_v41, %v188_v19  ;;  %v1024_v18 = vld [vmem:[#allocation8] sm:$0xff] }
  0xa8   :  { %v277_v50 = vmul.f32 %v1447_v43, %v188_v19 }
  0xa9   :  { %v306_v28 = vunpack.c.l.b16 %v290_v23  ;;  %v282_v30 = vpack.c.bf16 %v274_v25, %v274_v25  ;;  %v283_v31 = vpack.c.bf16 %v275_v26, %v275_v26  ;;  %v284_v53 = vpack.c.bf16 %v276_v46, %v276_v46 }
  0xaa   :  { %v285_v57 = vpack.c.bf16 %v277_v50, %v277_v50 }
  0xab   :  { %v298_v35 = vunpack.c.l.b16 %v282_v30  ;;  %v299_v36 = vunpack.c.l.b16 %v283_v31  ;;  %v300_v59 = vunpack.c.l.b16 %v284_v53 }
  0xac   :  { %v226_v22 = vpop.f32.mrf.mxu1  ;;  %v189_v37 = vpop.f32.mrf.mxu0  ;;  %v301_v60 = vunpack.c.l.b16 %v285_v57 }
  0xad   :  { %v227_v24 = vadd.f32 %v226_v22, %v196_v15  ;;  %v302_v39 = vpack.c.b16 %v299_v36, %v298_v35  ;;  %v190_v40 = vadd.f32 %v189_v37, %v161_v16  ;;  %v1025_v16 = vld [vmem:[#allocation8 + $0x8] sm:$0xff] }
  0xae   :  { %v303_v63 = vpack.c.b16 %v301_v60, %v300_v59  ;;  %257 = vmatpush.bf16.msra.mxu2 %v1025_v16  ;;  %v238_v60 = vperm.slane %v1434_v13, 2 }
  0xaf   :  { %v291_v27 = vpack.c.bf16 %v227_v24, %v227_v24  ;;  %v278_v48 = vmul.f32 %v1438_v20, %v190_v40  ;;  %v279_v49 = vmul.f32 %v1440_v21, %v190_v40  ;;  %v280_v1 = vmul.f32 %v1445_v41, %v190_v40 }
  0xb0   :  { %v281_v2 = vmul.f32 %v1447_v43, %v190_v40 }
  0xb1   :  { %v307_v29 = vunpack.c.l.b16 %v291_v27  ;;  %v286_v54 = vpack.c.bf16 %v278_v48, %v278_v48  ;;  %v287_v55 = vpack.c.bf16 %v279_v49, %v279_v49  ;;  %v288_v3 = vpack.c.bf16 %v280_v1, %v280_v1 }
  0xb2   :  { %v289_v4 = vpack.c.bf16 %v281_v2, %v281_v2  ;;  %258 = vmatpush.bf16.msra.mxu2 %v1024_v18 }
  0xb3   :  { %v308_v32 = vpack.c.b16 %v307_v29, %v306_v28  ;;  %v341_v61 = vunpack.c.l.b16 %v286_v54  ;;  %v342_v62 = vunpack.c.l.b16 %v287_v55  ;;  %v343_v5 = vunpack.c.l.b16 %v288_v3 }
  0xb4   :  { %v229_v33 = vpop.f32.mrf.mxu1  ;;  %v344_v9 = vunpack.c.l.b16 %v289_v4 }
  0xb5   :  { %v316_v34 = vsel %vm174_vm0, %v308_v32, 0  ;;  %v230_v38 = vadd.f32 %v229_v33, %v196_v15  ;;  %v345_v0 = vpack.c.b16 %v342_v62, %v341_v61  ;;  %975 = vmatmul.msk.bf16.vlgmr.msra.gmra.mxu2 %vm174_vm0, %v1417_v8 }
  0xb6   :  { %325 = vmatpush.bf16.xpose.msra.mxu3 %v316_v34  ;;  %v346_v10 = vpack.c.b16 %v344_v9, %v343_v5 }
  0xb7   :  { %v292_v44 = vpack.c.bf16 %v230_v38, %v230_v38 }
  0xb9   :  { %v349_v51 = vunpack.c.l.b16 %v292_v44 }
  0xbc   :  { %v231_v42 = vpop.f32.mrf.mxu1 }
  0xbd   :  { %v232_v45 = vadd.f32 %v231_v42, %v196_v15  ;;  %977 = vmatmul.msk.bf16.vlgmr.msra.gmra.mxu3 %vm174_vm0, %v302_v39 }
  0xbf   :  { %v293_v47 = vpack.c.bf16 %v232_v45, %v232_v45 }
  0xc1   :  { %v350_v52 = vunpack.c.l.b16 %v293_v47 }
  0xc3   :  { %v351_v56 = vpack.c.b16 %v350_v52, %v349_v51 }
  0xc5   :  { %v359_v58 = vsel %vm174_vm0, %v351_v56, 0  ;;  %976 = vmatmul.msk.bf16.gmra.mxu2 %vm174_vm0, %v1430_v12 }
  0xc6   :  { %368 = vmatpush.bf16.xpose.msrb.mxu0 %v359_v58 }
  0xcd   :  { %978 = vmatmul.msk.bf16.gmra.mxu3 %vm174_vm0, %v303_v63  ;;  %979 = vmatmul.msk.bf16.vlgmr.msrb.gmra.mxu0 %vm174_vm0, %v345_v0 }
  0xdd   :  { %980 = vmatmul.msk.bf16.gmra.mxu0 %vm174_vm0, %v346_v10 }
 0x138   :  { %v260_v0 = vpop.f32.mrf.mxu2 }
 0x139   :  { %v261_v10 = vadd.f32 %v260_v0, %v238_v60 }
 0x140   :  { %v327_v11 = vpop.f32.mrf.mxu3 }
 0x141   :  { %v380_v14 = vmul.f32 0.35355338, %v327_v11 }
 0x143   :  { %v389_v15 = vsel %vm388_vm1, %v380_v14, -inf }
 0x144   :  { %390 = vmax.xlane.f32.xlu1 %v389_v15  ;;  %v589_v15 = vpack.c.bf16 %v261_v10, %v261_v10 }
 0x148   :  { %v329_v17 = vpop.f32.mrf.mxu3 }
 0x149   :  { %v381_v19 = vmul.f32 0.35355338, %v329_v17  ;;  %v262_v17 = vpop.f32.mrf.mxu2 }
 0x14a   :  { %v370_v22 = vpop.f32.mrf.mxu0  ;;  %v263_v18 = vadd.f32 %v262_v17, %v238_v60 }
 0x14b   :  { %v384_v23 = vmul.f32 0.35355338, %v370_v22  ;;  %v392_v24 = vsel %vm388_vm1, %v381_v19, -inf }
 0x14c   :  { %393 = vmax.xlane.f32.xlu1 %v392_v24 }
 0x14d   :  { %v401_v25 = vsel %vm388_vm1, %v384_v23, -inf }
 0x14e   :  { %402 = vmax.xlane.f32.xlu0 %v401_v25  ;;  %v605_v25 = vunpack.c.l.b16 %v589_v15 }
 0x150   :  { %v332_v26 = vpop.f32.mrf.mxu3 }
 0x151   :  { %v382_v31 = vmul.f32 0.35355338, %v332_v26  ;;  %v590_v26 = vpack.c.bf16 %v263_v18, %v263_v18 }
 0x152   :  { %v372_v27 = vpop.f32.mrf.mxu0 }
 0x153   :  { %v385_v28 = vmul.f32 0.35355338, %v372_v27  ;;  %v395_v37 = vsel %vm388_vm1, %v382_v31, -inf }
 0x155   :  { %v404_v29 = vsel %vm388_vm1, %v385_v28, -inf }
 0x156   :  { %405 = vmax.xlane.f32.xlu0 %v404_v29 }
 0x158   :  { %v334_v30 = vpop.f32.mrf.mxu3 }
 0x159   :  { %v383_v32 = vmul.f32 0.35355338, %v334_v30 }
 0x15a   :  { %v375_v33 = vpop.f32.mrf.mxu0 }
 0x15b   :  { %v386_v34 = vmul.f32 0.35355338, %v375_v33  ;;  %v398_v35 = vsel %vm388_vm1, %v383_v32, -inf }
 0x15c   :  { %399 = vmax.xlane.f32.xlu1 %v398_v35 }
 0x15d   :  { %v407_v36 = vsel %vm388_vm1, %v386_v34, -inf }
 0x15e   :  { %408 = vmax.xlane.f32.xlu2 %v407_v36  ;;  %396 = vmax.xlane.f32.xlu0 %v395_v37 }
 0x162   :  { %v377_v8 = vpop.f32.mrf.mxu0 }
 0x163   :  { %v387_v38 = vmul.f32 0.35355338, %v377_v8 }
 0x165   :  { %v410_v39 = vsel %vm388_vm1, %v387_v38, -inf }
 0x166   :  { %411 = vmax.xlane.f32.xlu2 %v410_v39 }
 0x1b7   :  { %v391_v40 = vpop.xlane.xlu1 %390 }
 0x1b8   :  { %v413_v42 = vsub.f32 %v380_v14, %v391_v40 }
 0x1ba   :  { %v421_v44 = vmul.f32 1.442695, %v413_v42 }
 0x1bc   :  { %1047 = vpow2.f32 %v421_v44 }
 0x1bf   :  { %v394_v45 = vpop.xlane.xlu1 %393 }
 0x1c0   :  { %v414_v50 = vsub.f32 %v381_v19, %v394_v45 }
 0x1c1   :  { %v403_v46 = vpop.xlane.xlu0 %402 }
 0x1c2   :  { %v1472_v47 = vpop.eup %1047  ;;  %v417_v48 = vsub.f32 %v384_v23, %v403_v46  ;;  %v423_v12 = vmul.f32 1.442695, %v414_v50 }
 0x1c3   :  { %v437_v49 = vsel %vm388_vm1, %v1472_v47, 0.0 }
 0x1c4   :  { %v429_v51 = vmul.f32 1.442695, %v417_v48  ;;  %438 = vadd.xlane.f32.xlu1 %v437_v49 }
 0x1c6   :  { %1049 = vpow2.f32 %v429_v51 }
 0x1c7   :  { %1051 = vpow2.f32 %v423_v12 }
 0x1c9   :  { %v406_v52 = vpop.xlane.xlu0 %405 }
 0x1ca   :  { %v418_v53 = vsub.f32 %v385_v28, %v406_v52  ;;  %v606_v28 = vunpack.c.l.b16 %v590_v26 }
 0x1cc   :  { %v1476_v54 = vpop.eup %1049  ;;  %v431_v55 = vmul.f32 1.442695, %v418_v53  ;;  %v607_v29 = vpack.c.b16 %v606_v28, %v605_v25 }
 0x1cd   :  { %v449_v56 = vsel %vm388_vm1, %v1476_v54, 0.0  ;;  %v1481_v61 = vpop.eup %1051 }
 0x1ce   :  { %1053 = vpow2.f32 %v431_v55  ;;  %450 = vadd.xlane.f32.xlu2 %v449_v56  ;;  %v440_v5 = vsel %vm388_vm1, %v1481_v61, 0.0  ;;  %622 = vmatpush.bf16.msrb.mxu1 %v607_v29 }
 0x1cf   :  { %v400_v57 = vpop.xlane.xlu1 %399 }
 0x1d0   :  { %v416_v2 = vsub.f32 %v383_v32, %v400_v57 }
 0x1d1   :  { %v409_v58 = vpop.xlane.xlu2 %408  ;;  %v397_v59 = vpop.xlane.xlu0 %396 }
 0x1d2   :  { %v419_v62 = vsub.f32 %v386_v34, %v409_v58  ;;  %v415_v63 = vsub.f32 %v382_v31, %v397_v59  ;;  %v427_v11 = vmul.f32 1.442695, %v416_v2  ;;  %v265_v34 = vpop.f32.mrf.mxu2 }
 0x1d3   :  { %v266_v35 = vadd.f32 %v265_v34, %v238_v60 }
 0x1d4   :  { %v1483_v1 = vpop.eup %1053  ;;  %v433_v3 = vmul.f32 1.442695, %v419_v62  ;;  %v425_v4 = vmul.f32 1.442695, %v415_v63 }
 0x1d5   :  { %v452_v9 = vsel %vm388_vm1, %v1483_v1, 0.0  ;;  %v591_v8 = vpack.c.bf16 %v266_v35, %v266_v35 }
 0x1d6   :  { %1055 = vpow2.f32 %v433_v3  ;;  %441 = vadd.xlane.f32.xlu2 %v440_v5  ;;  %453 = vadd.xlane.f32.xlu0 %v452_v9 }
 0x1d7   :  { %1057 = vpow2.f32 %v425_v4  ;;  %v646_v39 = vunpack.c.l.b16 %v591_v8 }
 0x1d8   :  { %1059 = vpow2.f32 %v427_v11 }
 0x1d9   :  { %v412_v14 = vpop.xlane.xlu2 %411 }
 0x1da   :  { %v420_v16 = vsub.f32 %v387_v38, %v412_v14  ;;  %v267_v36 = vpop.f32.mrf.mxu2 }
 0x1db   :  { %v268_v37 = vadd.f32 %v267_v36, %v238_v60 }
 0x1dc   :  { %v1489_v19 = vpop.eup %1055  ;;  %v435_v22 = vmul.f32 1.442695, %v420_v16 }
 0x1dd   :  { %v1491_v23 = vpop.eup %1057  ;;  %v455_v24 = vsel %vm388_vm1, %v1489_v19, 0.0  ;;  %v592_v38 = vpack.c.bf16 %v268_v37, %v268_v37 }
 0x1de   :  { %1061 = vpow2.f32 %v435_v22  ;;  %456 = vadd.xlane.f32.xlu0 %v455_v24  ;;  %v443_v27 = vsel %vm388_vm1, %v1491_v23, 0.0  ;;  %v1497_v30 = vpop.eup %1059 }
 0x1df   :  { %444 = vadd.xlane.f32.xlu2 %v443_v27  ;;  %v446_v33 = vsel %vm388_vm1, %v1497_v30, 0.0  ;;  %v647_v40 = vunpack.c.l.b16 %v592_v38 }
 0x1e1   :  { %v648_v42 = vpack.c.b16 %v647_v40, %v646_v39 }
 0x1e3   :  { %663 = vmatpush.bf16.msrb.mxu2 %v648_v42 }
 0x1e4   :  { %v1499_v31 = vpop.eup %1061 }
 0x1e5   :  { %v458_v32 = vsel %vm388_vm1, %v1499_v31, 0.0 }
 0x1e6   :  { %459 = vadd.xlane.f32.xlu1 %v458_v32  ;;  %447 = vadd.xlane.f32.xlu0 %v446_v33 }
 0x237   :  { %v439_v44 = vpop.xlane.xlu1 %438 }
 0x238   :  { %1063 = vrcp.f32 %v439_v44  ;;  %v472_v56 = vand.u32 2147483648, %v439_v44  ;;  %vm466_vm3 = vweird.f32 %v439_v44  ;;  %v470_v58 = vand.u32 2147483647, %v439_v44 }
 0x23a   :  { %v473_v62 = vor.u32 1.1754944e-38, %v472_v56  ;;  %vm471_vm5 = vcmp.eq.f32.partialorder %v470_v58, 8.507059e+37 }
 0x23e   :  { %v1064_v45 = vpop.eup %1063 }
 0x23f   :  { %v462_v46 = vmul.f32 %v1064_v45, %v439_v44  ;;  %vm467_vm2 = vweird.f32 %v1064_v45 }
 0x240   :  { %vm468_vm4 = vmor %vm466_vm3, %vm467_vm2 }
 0x241   :  { %v451_v48 = vpop.xlane.xlu2 %450  ;;  %v463_v49 = vsub.f32 1.0, %v462_v46 }
 0x242   :  { %1065 = vrcp.f32 %v451_v48  ;;  %v532_v0 = vand.u32 2147483648, %v451_v48  ;;  %vm526_vm7 = vweird.f32 %v451_v48  ;;  %v530_v14 = vand.u32 2147483647, %v451_v48 }
 0x243   :  { %v464_v50 = vmul.f32 %v1064_v45, %v463_v49 }
 0x244   :  { %v533_v17 = vor.u32 1.1754944e-38, %v532_v0  ;;  %vm531_vm11 = vcmp.eq.f32.partialorder %v530_v14, 8.507059e+37 }
 0x245   :  { %v465_v55 = vadd.f32 %v1064_v45, %v464_v50 }
 0x247   :  { %v469_v60 = vsel %vm468_vm4, %v1064_v45, %v465_v55 }
 0x248   :  { %v1066_v51 = vpop.eup %1065  ;;  %v474_v3 = vsel %vm471_vm5, %v473_v62, %v469_v60 }
 0x249   :  { %v522_v12 = vmul.f32 %v1066_v51, %v451_v48  ;;  %v442_v52 = vpop.xlane.xlu2 %441  ;;  %v454_v53 = vpop.xlane.xlu0 %453  ;;  %vm527_vm6 = vweird.f32 %v1066_v51  ;;  %v475_v24 = vmul.f32 %v1472_v47, %v474_v3 }
 0x24a   :  { %1067 = vrcp.f32 %v442_v52  ;;  %vm1511_vm8 = vmor %vm526_vm7, %vm527_vm6  ;;  %v485_v18 = vand.u32 2147483647, %v442_v52  ;;  %v487_v27 = vand.u32 2147483648, %v442_v52  ;;  %v545_v29 = vand.u32 2147483647, %v454_v53 }
 0x24b   :  { %v523_v57 = vsub.f32 1.0, %v522_v12  ;;  %1069 = vrcp.f32 %v454_v53  ;;  %v547_v32 = vand.u32 2147483648, %v454_v53  ;;  %vm481_vm12 = vweird.f32 %v442_v52 }
 0x24c   :  { %vm486_vm14 = vcmp.eq.f32.partialorder %v485_v18, 8.507059e+37  ;;  %vm541_vm15 = vweird.f32 %v454_v53  ;;  %v488_v38 = vor.u32 1.1754944e-38, %v487_v27  ;;  %v581_v44 = vpack.c.bf16 %v475_v24, %v475_v24 }
 0x24d   :  { %v524_v59 = vmul.f32 %v1066_v51, %v523_v57  ;;  %vm546_vm3 = vcmp.eq.f32.partialorder %v545_v29, 8.507059e+37  ;;  %v548_v46 = vor.u32 1.1754944e-38, %v547_v32 }
 0x24e   :  { %v597_v57 = vunpack.c.l.b16 %v581_v44 }
 0x24f   :  { %v525_v4 = vadd.f32 %v1066_v51, %v524_v59 }
 0x250   :  { %v1068_v63 = vpop.eup %1067 }
 0x251   :  { %v1070_v2 = vpop.eup %1069  ;;  %v477_v5 = vmul.f32 %v1068_v63, %v442_v52  ;;  %v1505_v9 = vpop.xlane.xlu0 %456  ;;  %v529_v25 = vsel %vm1511_vm8, %v1066_v51, %v525_v4  ;;  %vm482_vm9 = vweird.f32 %v1068_v63 }
 0x252   :  { %v537_v10 = vmul.f32 %v1070_v2, %v454_v53  ;;  %v1507_v11 = vpop.xlane.xlu2 %444  ;;  %1071 = vrcp.f32 %v1505_v9  ;;  %vm542_vm10 = vweird.f32 %v1070_v2  ;;  %v534_v35 = vsel %vm531_vm11, %v533_v17, %v529_v25  ;;  %vm1520_vm13 = vmor %vm481_vm12, %vm482_vm9 }
 0x253   :  { %v478_v15 = vsub.f32 1.0, %v477_v5  ;;  %1073 = vrcp.f32 %v1507_v11  ;;  %vm543_vm2 = vmor %vm541_vm15, %vm542_vm10  ;;  %v535_v51 = vmul.f32 %v1476_v54, %v534_v35  ;;  %v500_v53 = vand.u32 2147483647, %v1507_v11 }
 0x254   :  { %v538_v22 = vsub.f32 1.0, %v537_v10  ;;  %v502_v55 = vand.u32 2147483648, %v1507_v11  ;;  %v560_v59 = vand.u32 2147483647, %v1505_v9  ;;  %vm496_vm6 = vweird.f32 %v1507_v11 }
 0x255   :  { %v479_v26 = vmul.f32 %v1068_v63, %v478_v15  ;;  %vm1551_vm8 = vcmp.eq.f32.partialorder %v500_v53, 8.507059e+37  ;;  %vm556_vm9 = vweird.f32 %v1505_v9 }
 0x256   :  { %v539_v28 = vmul.f32 %v1070_v2, %v538_v22  ;;  %v503_v10 = vor.u32 1.1754944e-38, %v502_v55  ;;  %vm1560_vm11 = vcmp.eq.f32.partialorder %v560_v59, 8.507059e+37 }
 0x257   :  { %v480_v33 = vadd.f32 %v1068_v63, %v479_v26 }
 0x258   :  { %v1518_v34 = vpop.eup %1071  ;;  %v540_v47 = vadd.f32 %v1070_v2, %v539_v28 }
 0x259   :  { %v1074_v37 = vpop.eup %1073  ;;  %v484_v8 = vsel %vm1520_vm13, %v1068_v63, %v480_v33  ;;  %v552_v39 = vmul.f32 %v1518_v34, %v1505_v9  ;;  %v1529_v40 = vpop.xlane.xlu0 %447  ;;  %vm557_vm5 = vweird.f32 %v1518_v34  ;;  %v585_v63 = vpack.c.bf16 %v535_v51, %v535_v51 }
 0x25a   :  { %v1531_v42 = vpop.xlane.xlu1 %459  ;;  %v544_v45 = vsel %vm543_vm2, %v1070_v2, %v540_v47  ;;  %v492_v48 = vmul.f32 %v1074_v37, %v1507_v11  ;;  %v489_v49 = vsel %vm486_vm14, %v488_v38, %v484_v8  ;;  %1075 = vrcp.f32 %v1529_v40  ;;  %vm1556_vm10 = vmor %vm556_vm9, %vm557_vm5 }
 0x25b   :  { %v553_v50 = vsub.f32 1.0, %v552_v39  ;;  %v549_v12 = vsel %vm546_vm3, %v548_v46, %v544_v45  ;;  %1077 = vrcp.f32 %v1531_v42  ;;  %vm497_vm4 = vweird.f32 %v1074_v37 }
 0x25c   :  { %v493_v52 = vsub.f32 1.0, %v492_v48  ;;  %v490_v60 = vmul.f32 %v1481_v61, %v489_v49  ;;  %v550_v54 = vmul.f32 %v1483_v1, %v549_v12  ;;  %v562_v2 = vand.u32 2147483648, %v1505_v9  ;;  %vm1547_vm7 = vmor %vm496_vm6, %vm497_vm4 }
 0x25d   :  { %v554_v56 = vmul.f32 %v1518_v34, %v553_v50  ;;  %v638_v24 = vunpack.c.l.b16 %v585_v63  ;;  %v515_v28 = vand.u32 2147483647, %v1529_v40  ;;  %v517_v32 = vand.u32 2147483648, %v1529_v40  ;;  %v1026_v63 = vld [vmem:[#allocation10] sm:$0xff] }
 0x25e   :  { %v494_v58 = vmul.f32 %v1074_v37, %v493_v52  ;;  %v582_v3 = vpack.c.bf16 %v490_v60, %v490_v60  ;;  %v586_v1 = vpack.c.bf16 %v550_v54, %v550_v54  ;;  %v563_v26 = vor.u32 1.1754944e-38, %v562_v2  ;;  %v1027_v54 = vld [vmem:[#allocation10 + $0x8] sm:$0xff] }
 0x25f   :  { %v555_v62 = vadd.f32 %v1518_v34, %v554_v56  ;;  %v575_v38 = vand.u32 2147483647, %v1531_v42  ;;  %vm511_vm14 = vweird.f32 %v1529_v40  ;;  %v518_v45 = vor.u32 1.1754944e-38, %v517_v32  ;;  %716 = vmatpush.bf16.msrb.mxu3 %v1027_v54 }
 0x260   :  { %v495_v0 = vadd.f32 %v1074_v37, %v494_v58  ;;  %v1076_v4 = vpop.eup %1075  ;;  %v598_v17 = vunpack.c.l.b16 %v582_v3  ;;  %v639_v9 = vunpack.c.l.b16 %v586_v1  ;;  %vm571_vm2 = vweird.f32 %v1531_v42 }
 0x261   :  { %v1078_v14 = vpop.eup %1077  ;;  %v507_v16 = vmul.f32 %v1076_v4, %v1529_v40  ;;  %v559_v25 = vsel %vm1556_vm10, %v1518_v34, %v555_v62  ;;  %vm512_vm12 = vweird.f32 %v1076_v4  ;;  %vm516_vm3 = vcmp.eq.f32.partialorder %v515_v28, 8.507059e+37 }
 0x262   :  { %v499_v18 = vsel %vm1547_vm7, %v1074_v37, %v495_v0  ;;  %v567_v22 = vmul.f32 %v1078_v14, %v1531_v42  ;;  %v601_v29 = vpack.c.b16 %v598_v17, %v597_v57  ;;  %v642_v35 = vpack.c.b16 %v639_v9, %v638_v24  ;;  %vm513_vm15 = vmor %vm511_vm14, %vm512_vm12 }
 0x263   :  { %v508_v27 = vsub.f32 1.0, %v507_v16  ;;  %v504_v36 = vsel %vm1551_vm8, %v503_v10, %v499_v18  ;;  %v577_v37 = vand.u32 2147483648, %v1531_v42  ;;  %v564_v34 = vsel %vm1560_vm11, %v563_v26, %v559_v25  ;;  %717 = vmatpush.bf16.msrb.mxu3 %v1026_v63 }
 0x264   :  { %v568_v33 = vsub.f32 1.0, %v567_v22  ;;  %981 = vmatmul.msk.bf16.vlgmr.msrb.gmra.mxu1 %vm388_vm1, %v601_v29  ;;  %vm572_vm13 = vweird.f32 %v1078_v14  ;;  %983 = vmatmul.msk.bf16.vlgmr.msrb.gmra.mxu2 %vm388_vm1, %v642_v35  ;;  %v505_v44 = vmul.f32 %v1491_v23, %v504_v36  ;;  %v565_v48 = vmul.f32 %v1489_v19, %v564_v34 }
 0x265   :  { %v509_v47 = vmul.f32 %v1076_v4, %v508_v27  ;;  %vm573_vm4 = vmor %vm571_vm2, %vm572_vm13  ;;  %v578_v49 = vor.u32 1.1754944e-38, %v577_v37  ;;  %vm576_vm5 = vcmp.eq.f32.partialorder %v575_v38, 8.507059e+37  ;;  %vm854_vm12 = vcmask 523264  }
 0x266   :  { %v569_v8 = vmul.f32 %v1078_v14, %v568_v33  ;;  %v583_v53 = vpack.c.bf16 %v505_v44, %v505_v44  ;;  %v587_v55 = vpack.c.bf16 %v565_v48, %v565_v48 }
 0x267   :  { %v510_v39 = vadd.f32 %v1076_v4, %v509_v47  ;;  %v1302_v47 = vmov 32.0  }
 0x268   :  { %v570_v46 = vadd.f32 %v1078_v14, %v569_v8  ;;  %v599_v58 = vunpack.c.l.b16 %v583_v53  ;;  %v640_v59 = vunpack.c.l.b16 %v587_v55  ;;  %1079 = vrcp.f32 %v1302_v47  ;;  %v1029_v53 = vld [vmem:[#allocation11 + $0x8] sm:$0xff]  ;;  %v1028_v55 = vld [vmem:[#allocation11] sm:$0xff] }
 0x269   :  { %v514_v50 = vsel %vm513_vm15, %v1076_v4, %v510_v39  ;;  %810 = vmatpush.bf16.msra.mxu0 %v1029_v53 }
 0x26a   :  { %v519_v51 = vsel %vm516_vm3, %v518_v45, %v514_v50  ;;  %v574_v12 = vsel %vm573_vm4, %v1078_v14, %v570_v46 }
 0x26b   :  { %v520_v52 = vmul.f32 %v1497_v30, %v519_v51  ;;  %v579_v40 = vsel %vm576_vm5, %v578_v49, %v574_v12 }
 0x26c   :  { %v580_v23 = vmul.f32 %v1499_v31, %v579_v40 }
 0x26d   :  { %v584_v56 = vpack.c.bf16 %v520_v52, %v520_v52  ;;  %811 = vmatpush.bf16.msra.mxu0 %v1028_v55 }
 0x26e   :  { %v588_v57 = vpack.c.bf16 %v580_v23, %v580_v23  ;;  %v1080_v37 = vpop.eup %1079 }
 0x26f   :  { %v600_v42 = vunpack.c.l.b16 %v584_v56  ;;  %v733_v34 = vmul.f32 32.0, %v1080_v37 }
 0x270   :  { %v641_v19 = vunpack.c.l.b16 %v588_v57 }
 0x271   :  { %v602_v60 = vpack.c.b16 %v600_v42, %v599_v58  ;;  %v734_v8 = vsub.f32 1.0, %v733_v34 }
 0x272   :  { %v643_v62 = vpack.c.b16 %v641_v19, %v640_v59 }
 0x273   :  { %v735_v38 = vmul.f32 %v1080_v37, %v734_v8 }
 0x274   :  { %982 = vmatmul.msk.bf16.gmra.mxu1 %vm388_vm1, %v602_v60  ;;  %984 = vmatmul.msk.bf16.gmra.mxu2 %vm388_vm1, %v643_v62  ;;  %vm737_vm1 = vweird.f32 %v1080_v37 }
 0x275   :  { %v736_v39 = vadd.f32 %v1080_v37, %v735_v38 }
 0x277   :  { %v1603_v44 = vsel %vm737_vm1, %v1080_v37, %v736_v39 }
 0x2e1   :  { %v624_v30 = vpop.f32.mrf.mxu1 }
 0x2e2   :  { %v675_v1 = vmul.f32 %v624_v30, %v1438_v20 }
 0x2e7   :  { %v665_v0 = vpop.f32.mrf.mxu2 }
 0x2e8   :  { %v676_v14 = vmul.f32 %v665_v0, %v1438_v20  ;;  %v694_v20 = vperm.slane %v1434_v13, 3 }
 0x2e9   :  { %v626_v31 = vpop.f32.mrf.mxu1 }
 0x2ea   :  { %v677_v5 = vmul.f32 %v626_v31, %v1440_v21 }
 0x2ec   :  { %v679_v16 = vadd.f32 %v677_v5, %v675_v1  ;;  %v777_v5 = vperm.slane %v1434_v13, 4 }
 0x2ef   :  { %v667_v2 = vpop.f32.mrf.mxu2 }
 0x2f0   :  { %v678_v61 = vmul.f32 %v667_v2, %v1440_v21 }
 0x2f1   :  { %v629_v3 = vpop.f32.mrf.mxu1 }
 0x2f2   :  { %v681_v15 = vmul.f32 %v629_v3, %v1445_v41  ;;  %v680_v17 = vadd.f32 %v678_v61, %v676_v14  ;;  %v780_v14 = vperm.slane %v1434_v13, 5 }
 0x2f4   :  { %v683_v24 = vadd.f32 %v681_v15, %v679_v16 }
 0x2f7   :  { %v670_v4 = vpop.f32.mrf.mxu2 }
 0x2f8   :  { %v682_v11 = vmul.f32 %v670_v4, %v1445_v41 }
 0x2f9   :  { %v631_v10 = vpop.f32.mrf.mxu1 }
 0x2fa   :  { %v685_v18 = vmul.f32 %v631_v10, %v1447_v43  ;;  %v684_v9 = vadd.f32 %v682_v11, %v680_v17 }
 0x2fc   :  { %v687_v26 = vadd.f32 %v685_v18, %v683_v24  ;;  %v1033_v24 = vld [vmem:[%s1652_s8 + $0x18] sm:$0xff] }
 0x2fd   :  { %862 = vmatpush.bf16.msra.mxu3 %v1033_v24 }
 0x2ff   :  { %v672_v22 = vpop.f32.mrf.mxu2 }
 0x300   :  { %v686_v25 = vmul.f32 %v672_v22, %v1447_v43 }
 0x302   :  { %v688_v21 = vadd.f32 %v686_v25, %v684_v9  ;;  %v1032_v9 = vld [vmem:[%s1652_s8 + $0x10] sm:$0xff]  ;;  %v1031_v25 = vld [vmem:[%s1652_s8 + $0x8] sm:$0xff] }
 0x303   :  { %863 = vmatpush.bf16.msra.mxu3 %v1032_v9 }
 0x304   :  { %v689_v27 = vpack.c.bf16 %v688_v21, %v687_v26  ;;  %v1030_v26 = vld [vmem:[%s1652_s8] sm:$0xff]  ;;  %s1303_s8 = smov [#allocation14]  }
 0x305   :  { %s930_s23 = sshll.u32 %s1303_s8, 4  ;;  %s931_s23 = int_to_ptr.vmem [resolvable:$true] %s930_s23 }
 0x306   :  { %993 = vmatmul.msk.bf16.vlgmr.msrb.gmra.mxu3 %vm174_vm0, %v689_v27  ;;  %v788_v27 = vperm.slane %v1434_v13, 6 }
 0x307   :  { %864 = vmatpush.bf16.msra.mxu3 %v1031_v25 }
 0x30b   :  { %865 = vmatpush.bf16.msra.mxu3 %v1030_v26 }
 0x389   :  { %v719_v28 = vpop.f32.mrf.mxu3 }
 0x38a   :  { %v720_v29 = vadd.f32 %v719_v28, %v694_v20 }
 0x38c   :  { %v724_v41 = vadd.f32 %v720_v29, %v1410_v6 }
 0x38e   :  { %v726_v32 = vsel %vm174_vm0, %v724_v41, 0.0 }
 0x38f   :  { %727 = vadd.xlane.f32.xlu1 %v726_v32 }
 0x391   :  { %v721_v33 = vpop.f32.mrf.mxu3 }
 0x392   :  { %v722_v35 = vadd.f32 %v721_v33, %v694_v20 }
 0x394   :  { %v725_v36 = vadd.f32 %v722_v35, %v1415_v7  ;;  %v829_v35 = vperm.slane %v1434_v13, 7 }
 0x396   :  { %v729_v43 = vsel %vm174_vm0, %v725_v36, 0.0 }
 0x397   :  { %730 = vadd.xlane.f32.xlu2 %v729_v43 }
 0x402   :  { %v728_v6 = vpop.xlane.xlu1 %727 }
 0x403   :  { %v739_v45 = vmul.f32 %v1603_v44, %v728_v6 }
 0x405   :  { %v741_v46 = vsub.f32 %v724_v41, %v739_v45 }
 0x407   :  { %v743_v48 = vmul.f32 %v741_v46, %v741_v46 }
 0x409   :  { %v745_v7 = vsel %vm174_vm0, %v743_v48, 0.0 }
 0x40a   :  { %v731_v49 = vpop.xlane.xlu2 %730  ;;  %746 = vadd.xlane.f32.xlu0 %v745_v7 }
 0x40b   :  { %v740_v50 = vmul.f32 %v1603_v44, %v731_v49 }
 0x40d   :  { %v742_v51 = vsub.f32 %v725_v36, %v740_v50 }
 0x40f   :  { %v744_v12 = vmul.f32 %v742_v51, %v742_v51 }
 0x411   :  { %v748_v52 = vsel %vm174_vm0, %v744_v12, 0.0 }
 0x412   :  { %749 = vadd.xlane.f32.xlu1 %v748_v52 }
 0x47d   :  { %v747_v40 = vpop.xlane.xlu0 %746 }
 0x47e   :  { %v751_v23 = vmul.f32 %v747_v40, %v1603_v44 }
 0x480   :  { %v753_v56 = vadd.f32 1e-05, %v751_v23 }
 0x482   :  { %1081 = vrsqrt.f32 %v753_v56  ;;  %vm761_vm7 = vweird.f32 %v753_v56 }
 0x485   :  { %v750_v57 = vpop.xlane.xlu1 %749 }
 0x486   :  { %v752_v58 = vmul.f32 %v750_v57, %v1603_v44 }
 0x488   :  { %v1082_v42 = vpop.eup %1081  ;;  %v754_v59 = vadd.f32 1e-05, %v752_v58 }
 0x489   :  { %v756_v19 = vmul.f32 %v1082_v42, %v753_v56  ;;  %vm762_vm6 = vweird.f32 %v1082_v42 }
 0x48a   :  { %1083 = vrsqrt.f32 %v754_v59  ;;  %vm763_vm8 = vmor %vm761_vm7, %vm762_vm6  ;;  %vm771_vm10 = vweird.f32 %v754_v59 }
 0x48b   :  { %v757_v60 = vmul.f32 %v1082_v42, %v756_v19  ;;  %v153_v19 = vld [vmem:[#allocation13 + $0x8] sm:$0x3] }
 0x48d   :  { %v758_v62 = vmul.f32 0.5, %v757_v60 }
 0x48f   :  { %v759_v54 = vsub.f32 1.5, %v758_v62 }
 0x490   :  { %v1084_v30 = vpop.eup %1083 }
 0x491   :  { %v760_v63 = vmul.f32 %v1082_v42, %v759_v54  ;;  %v766_v0 = vmul.f32 %v1084_v30, %v754_v59  ;;  %vm772_vm9 = vweird.f32 %v1084_v30 }
 0x492   :  { %vm773_vm11 = vmor %vm771_vm10, %vm772_vm9 }
 0x493   :  { %v767_v31 = vmul.f32 %v1084_v30, %v766_v0  ;;  %v764_v2 = vsel %vm763_vm8, %v1082_v42, %v760_v63  ;;  %v918_v63 = vperm.slane %v153_v19, 0 }
 0x494   :  { %v775_v61 = vmul.f32 %v764_v2, %v741_v46 }
 0x495   :  { %v768_v3 = vmul.f32 0.5, %v767_v31 }
 0x496   :  { %v778_v15 = vmul.f32 %v777_v5, %v775_v61 }
 0x497   :  { %v769_v4 = vsub.f32 1.5, %v768_v3  ;;  %v921_v3 = vperm.slane %v153_v19, 1 }
 0x498   :  { %v781_v17 = vadd.f32 %v780_v14, %v778_v15 }
 0x499   :  { %v770_v10 = vmul.f32 %v1084_v30, %v769_v4 }
 0x49b   :  { %v774_v1 = vsel %vm773_vm11, %v1084_v30, %v770_v10 }
 0x49c   :  { %v776_v11 = vmul.f32 %v774_v1, %v742_v51 }
 0x49e   :  { %v779_v16 = vmul.f32 %v777_v5, %v776_v11 }
 0x4a0   :  { %v782_v18 = vadd.f32 %v780_v14, %v779_v16 }
 0x4a2   :  { %v783_v22 = vpack.c.bf16 %v782_v18, %v781_v17 }
 0x4a4   :  { %1002 = vmatmul.msk.bf16.vlgmr.msra.gmra.mxu0 %vm174_vm0, %v783_v22 }
 0x521   :  { %v813_v21 = vpop.f32.mrf.mxu0 }
 0x522   :  { %v814_v20 = vadd.f32 %v813_v21, %v788_v27 }
 0x524   :  { %v818_v41 = vmax.f32 %v814_v20, 0.0 }
 0x529   :  { %v815_v28 = vpop.f32.mrf.mxu0 }
 0x52a   :  { %v816_v29 = vadd.f32 %v815_v28, %v788_v27 }
 0x52c   :  { %v819_v32 = vmax.f32 %v816_v29, 0.0 }
 0x52e   :  { %v820_v33 = vpack.c.bf16 %v819_v32, %v818_v41 }
 0x530   :  { %1019 = vmatmul.msk.bf16.vlgmr.msra.gmra.mxu3 %vm854_vm12, %v820_v33 }
 0x5b3   :  { %v867_v36 = vpop.f32.mrf.mxu3 }
 0x5b4   :  { %v868_v43 = vadd.f32 %v867_v36, %v829_v35 }
 0x5b6   :  { %v872_v47 = vadd.f32 %v868_v43, %v781_v17 }
 0x5b8   :  { %v874_v37 = vsel %vm174_vm0, %v872_v47, 0.0 }
 0x5b9   :  { %875 = vadd.xlane.f32.xlu2 %v874_v37 }
 0x5bb   :  { %v869_v34 = vpop.f32.mrf.mxu3 }
 0x5bc   :  { %v870_v8 = vadd.f32 %v869_v34, %v829_v35 }
 0x5be   :  { %v873_v38 = vadd.f32 %v870_v8, %v782_v18 }
 0x5c0   :  { %v877_v39 = vsel %vm174_vm0, %v873_v38, 0.0 }
 0x5c1   :  { %878 = vadd.xlane.f32.xlu0 %v877_v39 }
 0x62c   :  { %v876_v6 = vpop.xlane.xlu2 %875 }
 0x62d   :  { %v880_v45 = vmul.f32 %v876_v6, %v1603_v44 }
 0x62f   :  { %v882_v46 = vsub.f32 %v872_v47, %v880_v45 }
 0x631   :  { %v884_v48 = vmul.f32 %v882_v46, %v882_v46 }
 0x633   :  { %v886_v7 = vsel %vm174_vm0, %v884_v48, 0.0 }
 0x634   :  { %v879_v13 = vpop.xlane.xlu0 %878  ;;  %887 = vadd.xlane.f32.xlu1 %v886_v7 }
 0x635   :  { %v881_v49 = vmul.f32 %v879_v13, %v1603_v44 }
 0x637   :  { %v883_v50 = vsub.f32 %v873_v38, %v881_v49 }
 0x639   :  { %v885_v51 = vmul.f32 %v883_v50, %v883_v50 }
 0x63b   :  { %v889_v12 = vsel %vm174_vm0, %v885_v51, 0.0 }
 0x63c   :  { %890 = vadd.xlane.f32.xlu2 %v889_v12 }
 0x6a7   :  { %v888_v52 = vpop.xlane.xlu1 %887 }
 0x6a8   :  { %v892_v53 = vmul.f32 %v888_v52, %v1603_v44 }
 0x6aa   :  { %v894_v40 = vadd.f32 1e-05, %v892_v53 }
 0x6ac   :  { %1085 = vrsqrt.f32 %v894_v40  ;;  %vm902_vm14 = vweird.f32 %v894_v40 }
 0x6af   :  { %v891_v23 = vpop.xlane.xlu2 %890 }
 0x6b0   :  { %v893_v55 = vmul.f32 %v891_v23, %v1603_v44 }
 0x6b2   :  { %v1086_v56 = vpop.eup %1085  ;;  %v895_v57 = vadd.f32 1e-05, %v893_v55 }
 0x6b3   :  { %v897_v58 = vmul.f32 %v1086_v56, %v894_v40  ;;  %vm903_vm13 = vweird.f32 %v1086_v56 }
 0x6b4   :  { %1087 = vrsqrt.f32 %v895_v57  ;;  %vm904_vm15 = vmor %vm902_vm14, %vm903_vm13  ;;  %vm912_vm3 = vweird.f32 %v895_v57 }
 0x6b5   :  { %v898_v42 = vmul.f32 %v1086_v56, %v897_v58 }
 0x6b7   :  { %v899_v59 = vmul.f32 0.5, %v898_v42 }
 0x6b9   :  { %v900_v60 = vsub.f32 1.5, %v899_v59 }
 0x6ba   :  { %v1088_v62 = vpop.eup %1087 }
 0x6bb   :  { %v901_v54 = vmul.f32 %v1086_v56, %v900_v60  ;;  %v907_v30 = vmul.f32 %v1088_v62, %v895_v57  ;;  %vm913_vm2 = vweird.f32 %v1088_v62 }
 0x6bc   :  { %vm914_vm4 = vmor %vm912_vm3, %vm913_vm2 }
 0x6bd   :  { %v905_v0 = vsel %vm904_vm15, %v1086_v56, %v901_v54  ;;  %v908_v31 = vmul.f32 %v1088_v62, %v907_v30 }
 0x6be   :  { %v916_v2 = vmul.f32 %v905_v0, %v882_v46 }
 0x6bf   :  { %v909_v44 = vmul.f32 0.5, %v908_v31 }
 0x6c0   :  { %v919_v4 = vmul.f32 %v918_v63, %v916_v2 }
 0x6c1   :  { %v910_v5 = vsub.f32 1.5, %v909_v44 }
 0x6c2   :  { %v922_v61 = vadd.f32 %v921_v3, %v919_v4 }
 0x6c3   :  { %v911_v10 = vmul.f32 %v1088_v62, %v910_v5 }
 0x6c4   :  { %924 = vst.msk [vmem:[#allocation14] sm:$0xff] %vm174_vm0, %v922_v61 }
 0x6c5   :  { %v915_v1 = vsel %vm914_vm4, %v1088_v62, %v911_v10 }
 0x6c6   :  { %v917_v14 = vmul.f32 %v915_v1, %v883_v50 }
 0x6c8   :  { %v920_v15 = vmul.f32 %v918_v63, %v917_v14 }
 0x6ca   :  { %v923_v11 = vadd.f32 %v921_v3, %v920_v15 }
 0x6cc   :  { %925 = vst.msk [vmem:[#allocation14 + $0x8] sm:$0xff] %vm174_vm0, %v923_v11 }
 0x6cd   :  { %938 = dma.vmem_to_hbm [thread:$0]  %s931_s23, 256, %s933_s3, [#allocation4], %s1297_s12, %s1297_s12, %s1298_s13  }
 0x6ce   :  { %1289 = dma.done.wait [#allocation4], 256  }
 0x6cf   :  { %1290 = vsyncadd [#allocation4], 4294967040 }
 0x6d0   :  { %943 = vsyncpa [#allocation3], 1 }
 0x6d1   :  { %944 = vsyncpa [#allocation6], 1 }
 0x6d2   :  { %945 = vsyncpa [#allocation9], 1 }
 0x6d3   :  { %946 = vsyncpa [#allocation12], 1 }
 0x6d4   :  { %947 = vsyncpa [#allocation4], 1 }

</bundles_post_ra>
